<compile_context>
chip_gen: v7x
topology: tpu7x:2x2x1
jax: 0.10.0
libtpu: 0.0.40
codegen_flags: <defaults>
</compile_context>

<pallas_src>
import math

import jax
import jax.numpy as jnp
from jax.experimental import pallas as pl
from jax.experimental.pallas import tpu as pltpu


def _build_sinusoidal_pe(max_seq_len: int, d_model: int) -> jnp.ndarray:
    """Deterministic sinusoidal PE table, matching espnet PositionalEncoding."""
    position = jnp.arange(max_seq_len, dtype=jnp.float32)[:, None]            # (L, 1)
    div_term = jnp.exp(
        jnp.arange(0, d_model, 2, dtype=jnp.float32)
        * -(math.log(10000.0) / d_model)
    )                                                                          # (D/2,)
    pe = jnp.zeros((max_seq_len, d_model), dtype=jnp.float32)
    pe = pe.at[:, 0::2].set(jnp.sin(position * div_term))
    pe = pe.at[:, 1::2].set(jnp.cos(position * div_term))
    return pe                                                                  # (L, D)


def _scaled_pe_kernel(alpha_ref, x_ref, pe_ref, o_ref):
    # alpha_ref: scalar-prefetch ref in SMEM, shape (1,), float32
    # x_ref / o_ref: (tB, tL) lane-dense blocks of the flattened (B, T*D) array
    # pe_ref: (1, tL) float32 block of the flattened PE table (sublane broadcast)
    alpha = alpha_ref[0]
    x = x_ref[...].astype(jnp.float32)
    o_ref[...] = (x + alpha * pe_ref[...]).astype(o_ref.dtype)


def _sublane_quantum(itemsize: int) -> int:
    """Sublane packing quantum: 8 for f32, 16 for bf16, 32 for int8/fp8."""
    return max(8, 32 // itemsize)


def _lane_quantum(L: int, D: int) -> int:
    """Smallest legal lane-tile step.

    128 when the flattened row is lane-aligned; otherwise the smallest multiple
    of D that is also a multiple of 128 (so a tile never splits a PE row and
    stays lane-aligned), falling back to the full row when even that exceeds L.
    """
    if L % 128 == 0:
        return 128
    q = (128 // math.gcd(D, 128)) * D
    return q if q <= L else L


def _choose_tiles(B: int, L: int, D: int, itemsize: int,
                  target_bytes: int) -> tuple[int, int]:
    """Budget-driven (tB, tL): grow the lane tile first, then the batch tile."""
    sub_q = _sublane_quantum(itemsize)
    lane_q = _lane_quantum(L, D)

    tB = B if B <= sub_q else sub_q                       # full extent or mult of 8
    lanes_budget = max(1, target_bytes // (tB * itemsize))
    tL = min(L, max(lane_q, (lanes_budget // lane_q) * lane_q))
    if tL % 128 != 0 and tL != L:                         # safety (should not trigger)
        tL = L

    # Lane tile saturated at the full row and budget remains -> grow batch tile.
    if tL == L and B > tB:
        rows_budget = max(1, target_bytes // (L * itemsize))
        grown = max(tB, (rows_budget // sub_q) * sub_q)
        tB = B if grown >= B else grown                   # full B or multiple of 8
    return tB, tL


def scaled_positional_encoding(x: jnp.ndarray,
                               pe_flat: jnp.ndarray,
                               alpha: jnp.ndarray,
                               *,
                               target_bytes: int = 2 << 20) -> jnp.ndarray:
    """out = x + alpha * pe[:, :T]   (use_cache=True forward path).

    Args:
      x:       (B, T, D) input.
      pe_flat: (1, max_seq_len * D) float32 — the FULL sinusoidal table,
               flattened once at init (no per-call slice or cast needed).
      alpha:   learned scalar.
    """
    B, T, D = x.shape
    L = T * D
    assert pe_flat.ndim == 2 and pe_flat.shape[0] == 1 and pe_flat.shape[1] >= L

    # Free, contiguous reshape in the wrapper: lane-dense last axis.
    x2 = x.reshape(B, L)
    alpha_arr = jnp.asarray(alpha, jnp.float32).reshape((1,))

    itemsize = jnp.dtype(x.dtype).itemsize
    tB, tL = _choose_tiles(B, L, D, itemsize, target_bytes)

    n_lane = pl.cdiv(L, tL)
    n_row = pl.cdiv(B, tB)

    # Lane tiles outer / row tiles inner -> the batch-shared pe block index is
    # constant across the inner axis (no re-DMA per batch-row tile).  If the
    # lane axis has only one tile, lead with the row axis so the megacore
    # (v7x: 2 TCs) still gets >=2 tiles on the sharded leading axis.
    if n_lane >= 2 or n_row == 1:
        grid = (n_lane, n_row)
        x_map = lambda l, b, a: (b, l)
        pe_map = lambda l, b, a: (0, l)
    else:
        grid = (n_row, n_lane)
        x_map = lambda b, l, a: (b, l)
        pe_map = lambda b, l, a: (0, l)

    grid_spec = pltpu.PrefetchScalarGridSpec(
        num_scalar_prefetch=1,                                   # alpha -> SMEM
        grid=grid,
        in_specs=[
            pl.BlockSpec((tB, tL), x_map),                       # x
            pl.BlockSpec((1, tL), pe_map),                       # pe (batch-shared)
        ],
        out_specs=pl.BlockSpec((tB, tL), x_map),
    )

    cost = pl.CostEstimate(
        flops=2 * B * L,                                         # mul + add per elem
        transcendentals=0,
        bytes_accessed=2 * B * L * itemsize + L * 4,             # x read + out write + pe
    )

    out2 = pl.pallas_call(
        _scaled_pe_kernel,
        out_shape=jax.ShapeDtypeStruct((B, L), x.dtype),
        grid_spec=grid_spec,
        compiler_params=pltpu.CompilerParams(
            dimension_semantics=("parallel", "parallel")),
        cost_estimate=cost,
    )(alpha_arr, x2, pe_flat)

    return out2.reshape(B, T, D)


# TODO(synk): the use_cache=False branch (`_add_pe`: on-the-fly sin/cos with
# optional reversed positions) is not implemented; only the default
# use_cache=True forward path is covered, with the PE table precomputed.


if __name__ == "__main__":
    # Primary small-shape test: (batch, time, d_model)
    B, T, D = 2, 8, 32
    MAX_SEQ_LEN = 64

    key = jax.random.PRNGKey(0)
    x = jax.random.normal(key, (B, T, D), dtype=jnp.float32)

    # Deterministic parameter init (module __init__): alpha = 1.0, pe = sinusoidal.
    alpha = jnp.float32(1.0)
    pe_table = _build_sinusoidal_pe(MAX_SEQ_LEN, D)              # (L_max, D) f32
    pe_flat = pe_table.reshape(1, MAX_SEQ_LEN * D)               # init-time flatten

    out = scaled_positional_encoding(x, pe_flat, alpha)
    out = jax.block_until_ready(out)
    ref = x + alpha * pe_table[None, :T, :]
    assert out.shape == (B, T, D)
    assert jnp.allclose(out, ref, atol=1e-6), "mismatch vs reference (primary)"

    # Extra check 1: lane-unaligned row (T*D % 128 != 0) and non-multiple-of-8 batch.
    B1, T1, D1 = 9, 6, 20
    x1 = jax.random.normal(jax.random.PRNGKey(1), (B1, T1, D1), dtype=jnp.float32)
    pe1 = _build_sinusoidal_pe(MAX_SEQ_LEN, D1)
    out1 = scaled_positional_encoding(x1, pe1.reshape(1, -1), jnp.float32(0.5))
    ref1 = x1 + 0.5 * pe1[None, :T1, :]
    assert jnp.allclose(jax.block_until_ready(out1), ref1, atol=1e-6), "mismatch (unaligned)"

    # Extra check 2: force a multi-tile grid (partial row tile, several lane tiles).
    B2, T2, D2 = 10, 8, 64
    x2_in = jax.random.normal(jax.random.PRNGKey(2), (B2, T2, D2), dtype=jnp.float32)
    pe2 = _build_sinusoidal_pe(MAX_SEQ_LEN, D2)
    out2 = scaled_positional_encoding(x2_in, pe2.reshape(1, -1), jnp.float32(1.25),
                                      target_bytes=4096)
    ref2 = x2_in + 1.25 * pe2[None, :T2, :]
    assert jnp.allclose(jax.block_until_ready(out2), ref2, atol=1e-6), "mismatch (multi-tile)"

    # Extra check 3: single lane tile but multiple row tiles (grid-reorder path).
    B3, T3, D3 = 20, 4, 32
    x3 = jax.random.normal(jax.random.PRNGKey(3), (B3, T3, D3), dtype=jnp.float32)
    pe3 = _build_sinusoidal_pe(MAX_SEQ_LEN, D3)
    out3 = scaled_positional_encoding(x3, pe3.reshape(1, -1), jnp.float32(0.75),
                                      target_bytes=4096)
    ref3 = x3 + 0.75 * pe3[None, :T3, :]
    assert jnp.allclose(jax.block_until_ready(out3), ref3, atol=1e-6), "mismatch (reorder)"

    print("KERNEL_OK")
</pallas_src>

<mosaic_0001>
module attributes {stable_mosaic.version = 11 : i64} {
  func.func @_scaled_pe_kernel(%arg0: i32, %arg1: i32, %arg2: memref<1xf32, #tpu.memory_space<smem>>, %arg3: memref<2x256xf32, #tpu.memory_space<vmem>>, %arg4: memref<1x256xf32, #tpu.memory_space<vmem>>, %arg5: memref<2x256xf32, #tpu.memory_space<vmem>>) attributes {dimension_semantics = [#tpu.dimension_semantics<parallel>, #tpu.dimension_semantics<parallel>], iteration_bounds = array<i64: 1, 1>, scalar_prefetch = 1 : i64, scratch_operands = 0 : i64, tpu.core_type = #tpu.core_type<tc>, window_params = [{transform_indices = @transform_0, window_bounds = array<i64: 2, 256>}, {transform_indices = @transform_1, window_bounds = array<i64: 1, 256>}, {transform_indices = @transform_2, window_bounds = array<i64: 2, 256>}]} {
    %c0 = arith.constant 0 : index
    %0 = memref.load %arg2[%c0] : memref<1xf32, #tpu.memory_space<smem>>
    %c0_0 = arith.constant 0 : index
    %c0_1 = arith.constant 0 : index
    %1 = vector.load %arg3[%c0_0, %c0_1] : memref<2x256xf32, #tpu.memory_space<vmem>>, vector<2x256xf32>
    %c0_2 = arith.constant 0 : index
    %c0_3 = arith.constant 0 : index
    %2 = vector.load %arg4[%c0_2, %c0_3] : memref<1x256xf32, #tpu.memory_space<vmem>>, vector<1x256xf32>
    %3 = vector.broadcast %0 : f32 to vector<1x256xf32>
    %4 = arith.mulf %3, %2 : vector<1x256xf32>
    %5 = vector.broadcast %4 : vector<1x256xf32> to vector<2x256xf32>
    %6 = arith.addf %1, %5 : vector<2x256xf32>
    %c0_4 = arith.constant 0 : index
    %c0_5 = arith.constant 0 : index
    %7 = vector.load %arg5[%c0_4, %c0_5] : memref<2x256xf32, #tpu.memory_space<vmem>>, vector<2x256xf32>
    tpu.vector_store %arg5[%c0_4, %c0_5], %6 {strides = array<i32>} : memref<2x256xf32, #tpu.memory_space<vmem>>, vector<2x256xf32>,
    return
  }
  func.func @transform_0(%arg0: i32, %arg1: i32, %arg2: memref<1xf32, #tpu.memory_space<smem>>) -> (i32, i32) {
    %c0_i32 = arith.constant 0 : i32
    return %arg1, %arg0 : i32, i32
  }
  func.func @transform_1(%arg0: i32, %arg1: i32, %arg2: memref<1xf32, #tpu.memory_space<smem>>) -> (i32, i32) {
    %c0_i32 = arith.constant 0 : i32
    %c0_i32_0 = arith.constant 0 : i32
    return %c0_i32, %arg0 : i32, i32
  }
  func.func @transform_2(%arg0: i32, %arg1: i32, %arg2: memref<1xf32, #tpu.memory_space<smem>>) -> (i32, i32) {
    %c0_i32 = arith.constant 0 : i32
    return %arg1, %arg0 : i32, i32
  }
}

</mosaic_0001>

<bundles_post_ra>
// kernel: tpu_custom_call.1
= control target key start
LH: loop header
LB: loop body
LE: loop exit
PB: predicated region body
PF: predicated region fallthrough
CT: control target
= control target key end

     0   :  { %9 = vsyncpa [#allocation5], 0  ;;  %s228_s0 = inlined_call_operand.<no memory space> [shape: f32[1], index: 0, kind: input, shape index: {}]   ;;  %s229_s1 = inlined_call_operand.hbm [shape: f32[2,256], index: 1, kind: input, shape index: {}]   ;;  %s230_s2 = inlined_call_operand.hbm [shape: f32[1,2048], index: 2, kind: input, shape index: {}]   ;;  %s231_s3 = inlined_call_operand.hbm [shape: f32[2,256], index: 3, kind: output, shape index: {}]  }
   0x1   :  { %10 = vsyncpa [#allocation8], 0 }
   0x2   :  { %11 = vsyncpa [#allocation6], 0  ;;  %s155_s12 = smov [#allocation4]   ;;  %s156_s14 = smov [#allocation7]  }
   0x3   :  { %s18_s13 = sshll.u32 %s155_s12, 4  ;;  %s28_s15 = sshll.u32 %s156_s14, 4  ;;  %s19_s13 = int_to_ptr.vmem [resolvable:$true] %s18_s13  ;;  %s179_s15 = int_to_ptr.vmem [resolvable:$true] %s28_s15 }
   0x4   :  { %s83_s18 = scalar_lea.hbm %s229_s1, 64 }
   0x5   :  { %p84_p0 = scmp.ne.s32.totalorder %s229_s1, %s83_s18  ;;  %p87_p1 = scmp.lt.u32.totalorder %s83_s18, %s229_s1 }
   0x7   :  { %p89_p2 = pnand %p87_p1, %p84_p0 }
   0x9   :  { %92 = shalt.err (!%p89_p2)
}
   0xa   :  { %s93_s23 = scalar_lea.vmem %s19_s13, 64  ;;  %p98_p4 = scmp.lt.s32.totalorder %s19_s13, %s19_s13 }
   0xb   :  { %p94_p3 = scmp.ne.s32.totalorder %s19_s13, %s93_s23  ;;  %p99_p5 = scmp.lt.s32.totalorder %s93_s23, %s93_s23 }
   0xd   :  { %p100_p6 = por %p99_p5, %p98_p4 }
   0xf   :  { %p101_p7 = pnand %p100_p6, %p94_p3 }
  0x11   :  { %104 = shalt.err (!%p101_p7)
}
  0x12   :  { %21 = dma.hbm_to_vmem [thread:$0]  %s229_s1, 64, %s19_s13, [#allocation5]  }
  0x13   :  { %s105_s28 = scalar_lea.hbm %s230_s2, 32  ;;  %s107_s6 = scalar_lea.hbm %s230_s2, 256 }
  0x14   :  { %p106_p8 = scmp.ne.s32.totalorder %s230_s2, %s105_s28  ;;  %p108_p9 = scmp.lt.u32.totalorder %s107_s6, %s105_s28 }
  0x15   :  { %p109_p10 = scmp.lt.u32.totalorder %s105_s28, %s230_s2 }
  0x17   :  { %p110_p11 = por %p109_p10, %p108_p9 }
  0x19   :  { %p111_p12 = pnand %p110_p11, %p106_p8 }
  0x1b   :  { %114 = shalt.err (!%p111_p12)
}
  0x1c   :  { %s115_s1 = scalar_lea.vmem %s179_s15, 32  ;;  %p120_p0 = scmp.lt.s32.totalorder %s179_s15, %s179_s15 }
  0x1d   :  { %p116_p13 = scmp.ne.s32.totalorder %s179_s15, %s115_s1  ;;  %p121_p1 = scmp.lt.s32.totalorder %s115_s1, %s115_s1 }
  0x1f   :  { %p122_p2 = por %p121_p1, %p120_p0 }
  0x21   :  { %p123_p3 = pnand %p122_p2, %p116_p13 }
  0x23   :  { %126 = shalt.err (!%p123_p3)
}
  0x24   :  { %31 = dma.hbm_to_vmem [thread:$0]  %s230_s2, 32, %s179_s15, [#allocation8]  }
  0x25   :  { %149 = dma.done.wait [#allocation5], 64  }
  0x26   :  { %150 = vsyncadd [#allocation5], 4294967232 }
  0x27   :  { %151 = dma.done.wait [#allocation8], 32  }
  0x28   :  { %152 = vsyncadd [#allocation8], 4294967264  ;;  %v44_v0 = vlaneseq  ;;  %v157_v2 = vmov 1983009808   ;;  %v41_v4 = vstv %s228_s0  ;;  %v40_v8 = vld [vmem:[#allocation7] sm:$0x3] }
  0x29   :  { %v54_v3 = vunpack.c.l.s4 %v157_v2  ;;  %v42_v9 = vmul.f32 %v41_v4, %v40_v8  ;;  %v39_v14 = vld [vmem:[#allocation4] sm:$0xf]  ;;  %s158_s2 = smov [#allocation9]  }
  0x2a   :  { %v45_v1 = vshrl.u32 %v44_v0, 7  ;;  %s69_s13 = sshll.u32 %s158_s2, 4  ;;  %s70_s13 = int_to_ptr.vmem [resolvable:$true] %s69_s13 }
  0x2b   :  { %v55_v7 = vunpack.c.0.s8 %v54_v3  ;;  %s127_s14 = scalar_lea.vmem %s70_s13, 64  ;;  %p132_p5 = scmp.lt.s32.totalorder %s70_s13, %s70_s13 }
  0x2c   :  { %v46_v5 = vsub.s32 0, %v45_v1  ;;  %v50_v6 = vsub.s32 1, %v45_v1  ;;  %p128_p4 = scmp.ne.s32.totalorder %s70_s13, %s127_s14  ;;  %p133_p6 = scmp.lt.s32.totalorder %s127_s14, %s127_s14 }
  0x2d   :  { %v58_v12 = vsub.s32 %v55_v7, %v45_v1 }
  0x2e   :  { %v47_v10 = vrot.slane %v42_v9, %v46_v5  ;;  %v51_v11 = vrot.slane %v42_v9, %v50_v6  ;;  %p134_p7 = por %p133_p6, %p132_p5 }
  0x30   :  { %v52_v13 = vcombine.low %v47_v10, %v51_v11  ;;  %p135_p8 = pnand %p134_p7, %p128_p4 }
  0x32   :  { %v59_v15 = vrot.slane %v52_v13, %v58_v12 }
  0x34   :  { %v61_v16 = vadd.f32 %v59_v15, %v39_v14 }
  0x36   :  { %62 = vst [vmem:[#allocation9] sm:$0xf] %v61_v16 }
  0x37   :  { %138 = shalt.err (!%p135_p8)
}
  0x38   :  { %s139_s16 = scalar_lea.hbm %s231_s3, 64 }
  0x39   :  { %p140_p9 = scmp.ne.s32.totalorder %s231_s3, %s139_s16  ;;  %p143_p10 = scmp.lt.u32.totalorder %s139_s16, %s231_s3 }
  0x3b   :  { %p145_p11 = pnand %p143_p10, %p140_p9 }
  0x3d   :  { %148 = shalt.err (!%p145_p11)
}
  0x3e   :  { %72 = dma.vmem_to_hbm [thread:$0]  %s70_s13, 64, %s231_s3, [#allocation6]  }
  0x3f   :  { %153 = dma.done.wait [#allocation6], 64  }
  0x40   :  { %154 = vsyncadd [#allocation6], 4294967232 }
  0x41   :  { %76 = vsyncpa [#allocation5], 1 }
  0x42   :  { %77 = vsyncpa [#allocation8], 1 }
  0x43   :  { %78 = vsyncpa [#allocation6], 1 }

</bundles_post_ra>
